<compile_context>
chip_gen: v5e
topology: v5e:2x2
jax: 0.10.0
libtpu: 0.0.40
codegen_flags: <defaults>
</compile_context>

<pallas_src>
import jax
import jax.numpy as jnp
from jax.experimental import pallas as pl
from jax.experimental.pallas import tpu as pltpu

EMB_DIM = 64
VOCABS = (5, 3, 3)          # num_bond_types, num_bond_stereo, num_bond_conj
V_PAD = 8                   # pad each vocab to a sublane multiple
NUM_FEATS = len(VOCABS)
PACK = 4                    # edges packed per output row -> 256 lane-dense out


def bond_encoder_kernel(edge_ref, table_ref, out_ref):
    # edge_ref:  (tile_rows, PACK*3) int32 -- fused-table row index for each
    #            (edge, feature); the wrapper already folded the +8*j offsets.
    # table_ref: (PACK*24, PACK*64) f32    -- block-diagonal flattened tables.
    # out_ref:   (tile_rows, PACK*64) f32  -- PACK edge embeddings per row.
    edge = edge_ref[...]
    rows, cols = edge.shape
    k = table_ref.shape[0]
    iota = jax.lax.broadcasted_iota(jnp.int32, (rows, k), 1)
    # Each column hits a disjoint 8-lane window of the one-hot, so the
    # zero-init folds into the first compare and the rest are pure selects.
    onehot = (edge[:, 0:1] == iota).astype(jnp.float32)
    for j in range(1, cols):                     # static unroll (PACK*3 - 1)
        onehot = jnp.where(edge[:, j:j + 1] == iota, 1.0, onehot)
    out_ref[...] = jnp.dot(onehot, table_ref[...],
                           preferred_element_type=jnp.float32)


def _round_up(x, m):
    return ((x + m - 1) // m) * m


def make_blockdiag_table(tables, pack=PACK):
    # tables: (NUM_FEATS, V_PAD, EMB_DIM) zero-padded per-feature embeddings.
    flat = tables.reshape(NUM_FEATS * V_PAD, EMB_DIM)            # (24, 64)
    k, n = flat.shape
    big = jnp.zeros((pack * k, pack * n), jnp.float32)
    for p in range(pack):
        big = big.at[p * k:(p + 1) * k, p * n:(p + 1) * n].set(flat)
    return big                                                   # (96, 256)


def _vmem_limit_bytes(tile_rows, out_lanes, k_fused):
    # Lane-padding-aware budget: the (tile_rows, 12) int32 index block is held
    # in VMEM as (tile_rows, 128); iota / one-hot temporaries are the same.
    row128 = tile_rows * 128 * 4
    out_blk = tile_rows * out_lanes * 4
    tbl = k_fused * out_lanes * 4
    need = 2 * row128 + 2 * out_blk + 2 * tbl        # double-buffered in/out
    need += 4 * row128 + out_blk                     # iota / one-hot / dot tmp
    return int(min(max(need + (4 << 20), 32 << 20), 48 << 20))


def bond_encoder(edge_attr, tables, *, tile_rows=2048, pack=PACK):
    E = edge_attr.shape[0]
    cols = pack * NUM_FEATS                 # 12
    out_lanes = pack * EMB_DIM              # 256
    k_fused = pack * NUM_FEATS * V_PAD      # 96

    groups = pl.cdiv(E, pack)
    # Big tiles amortize per-step overhead; keep >= 2 grid steps when the
    # input allows it (v7x megacore) and keep the tile a multiple of 8.
    half = _round_up(max(1, pl.cdiv(groups, 2)), 8)
    tile_rows = max(8, min(_round_up(tile_rows, 8), half))
    n_tiles = pl.cdiv(groups, tile_rows)
    groups_pad = n_tiles * tile_rows
    E_pad = pack * groups_pad

    if E_pad != E:
        # Padded edges get index 0; their rows are dropped from the output.
        pad = jnp.zeros((E_pad - E, NUM_FEATS), edge_attr.dtype)
        edge_attr = jnp.concatenate([edge_attr, pad], axis=0)

    # One fused wrapper-side elementwise pass: cast + clamp (BondAttributeMapper
    # semantics) + fold the per-column fused-table offset (8*j).
    vmax = jnp.tile(jnp.asarray(VOCABS, jnp.int32) - 1, pack)        # (12,)
    offs = jnp.arange(cols, dtype=jnp.int32) * V_PAD                 # (12,)
    edge_packed = jnp.clip(
        edge_attr.reshape(groups_pad, cols).astype(jnp.int32), 0, vmax) + offs

    big_table = make_blockdiag_table(tables, pack)                   # (96, 256)

    out_packed = pl.pallas_call(
        bond_encoder_kernel,
        out_shape=jax.ShapeDtypeStruct((groups_pad, out_lanes), jnp.float32),
        grid_spec=pltpu.PrefetchScalarGridSpec(
            num_scalar_prefetch=0,
            grid=(n_tiles,),
            in_specs=[
                pl.BlockSpec((tile_rows, cols), lambda i: (i, 0)),
                # Constant block index -> table DMA'd once, not per step.
                pl.BlockSpec((k_fused, out_lanes), lambda i: (0, 0)),
            ],
            out_specs=pl.BlockSpec((tile_rows, out_lanes), lambda i: (i, 0)),
        ),
        compiler_params=pltpu.CompilerParams(
            dimension_semantics=("parallel",),
            vmem_limit_bytes=_vmem_limit_bytes(tile_rows, out_lanes, k_fused)),
    )(edge_packed, big_table)

    # (groups_pad, 256) is a row-major reshape of (E_pad, 64).
    out = out_packed.reshape(E_pad, EMB_DIM)
    # Skip the copy when no padding was added; padded tail rows hold index-0
    # embeddings (not zeros), so they must be dropped otherwise.
    return out if E_pad == E else out[:E]


def make_tables(key):
    # nn.Embedding default init ~ N(0, 1); stack & zero-pad vocab dim to V_PAD.
    tables = jnp.zeros((NUM_FEATS, V_PAD, EMB_DIM), jnp.float32)
    for i, v in enumerate(VOCABS):
        key, sub = jax.random.split(key)
        w = jax.random.normal(sub, (v, EMB_DIM), jnp.float32)
        tables = tables.at[i, :v, :].set(w)
    return tables


def reference(edge_attr, tables):
    out = jnp.zeros((edge_attr.shape[0], EMB_DIM), jnp.float32)
    for i in range(NUM_FEATS):
        out = out + jnp.take(tables[i], edge_attr[:, i], axis=0)
    return out


if __name__ == "__main__":
    key = jax.random.PRNGKey(0)
    k_tab, k_idx = jax.random.split(key)

    tables = make_tables(k_tab)

    E = 301  # ragged edge count: exercises 4-edge packing + tile padding
    cols = []
    for i, v in enumerate(VOCABS):
        k_idx, sub = jax.random.split(k_idx)
        cols.append(jax.random.randint(sub, (E,), 0, v, dtype=jnp.int32))
    edge_attr = jnp.stack(cols, axis=1)  # (E, 3) int32

    # Default tile_rows=2048 is clamped down for this small input so the grid
    # still has 2 steps (covers multi-step pipelining and the padded tail).
    out = bond_encoder(edge_attr, tables)
    out = jax.block_until_ready(out)

    ref = reference(edge_attr, tables)
    assert out.shape == (E, EMB_DIM)
    assert jnp.allclose(out, ref, atol=1e-5, rtol=1e-5)
    print("KERNEL_OK")
</pallas_src>

<mosaic_0001>
module attributes {stable_mosaic.version = 11 : i64} {
  func.func @bond_encoder_kernel(%arg0: i32, %arg1: memref<40x12xi32, #tpu.memory_space<vmem>>, %arg2: memref<96x256xf32, #tpu.memory_space<vmem>>, %arg3: memref<40x256xf32, #tpu.memory_space<vmem>>) attributes {dimension_semantics = [#tpu.dimension_semantics<parallel>], iteration_bounds = array<i64: 2>, scalar_prefetch = 0 : i64, scratch_operands = 0 : i64, tpu.core_type = #tpu.core_type<tc>, window_params = [{transform_indices = @transform_0, window_bounds = array<i64: 40, 12>}, {pipeline_mode = #tpu.pipeline_mode<synchronous>, transform_indices = @transform_1, window_bounds = array<i64: 96, 256>}, {transform_indices = @transform_2, window_bounds = array<i64: 40, 256>}]} {
    %c0 = arith.constant 0 : index
    %c0_0 = arith.constant 0 : index
    %0 = vector.load %arg1[%c0, %c0_0] : memref<40x12xi32, #tpu.memory_space<vmem>>, vector<40x12xi32>
    %1 = tpu.iota {dimensions = array<i32: 1>} : vector<40x96xi32>
    %2 = vector.extract_strided_slice %0 {offsets = [0, 0], sizes = [40, 1], strides = [1, 1]} : vector<40x12xi32> to vector<40x1xi32>
    %3 = vector.broadcast %2 : vector<40x1xi32> to vector<40x96xi32>
    %4 = arith.cmpi eq, %3, %1 : vector<40x96xi32>
    %5 = arith.extui %4 : vector<40x96xi1> to vector<40x96xi32>
    %6 = arith.sitofp %5 : vector<40x96xi32> to vector<40x96xf32>
    %7 = vector.extract_strided_slice %0 {offsets = [0, 1], sizes = [40, 1], strides = [1, 1]} : vector<40x12xi32> to vector<40x1xi32>
    %8 = vector.broadcast %7 : vector<40x1xi32> to vector<40x96xi32>
    %9 = arith.cmpi eq, %8, %1 : vector<40x96xi32>
    %cst = arith.constant 1.000000e+00 : f32
    %10 = vector.broadcast %cst : f32 to vector<40x96xf32>
    %11 = arith.select %9, %10, %6 : vector<40x96xi1>, vector<40x96xf32>
    %12 = vector.extract_strided_slice %0 {offsets = [0, 2], sizes = [40, 1], strides = [1, 1]} : vector<40x12xi32> to vector<40x1xi32>
    %13 = vector.broadcast %12 : vector<40x1xi32> to vector<40x96xi32>
    %14 = arith.cmpi eq, %13, %1 : vector<40x96xi32>
    %cst_1 = arith.constant 1.000000e+00 : f32
    %15 = vector.broadcast %cst_1 : f32 to vector<40x96xf32>
    %16 = arith.select %14, %15, %11 : vector<40x96xi1>, vector<40x96xf32>
    %17 = vector.extract_strided_slice %0 {offsets = [0, 3], sizes = [40, 1], strides = [1, 1]} : vector<40x12xi32> to vector<40x1xi32>
    %18 = vector.broadcast %17 : vector<40x1xi32> to vector<40x96xi32>
    %19 = arith.cmpi eq, %18, %1 : vector<40x96xi32>
    %cst_2 = arith.constant 1.000000e+00 : f32
    %20 = vector.broadcast %cst_2 : f32 to vector<40x96xf32>
    %21 = arith.select %19, %20, %16 : vector<40x96xi1>, vector<40x96xf32>
    %22 = vector.extract_strided_slice %0 {offsets = [0, 4], sizes = [40, 1], strides = [1, 1]} : vector<40x12xi32> to vector<40x1xi32>
    %23 = vector.broadcast %22 : vector<40x1xi32> to vector<40x96xi32>
    %24 = arith.cmpi eq, %23, %1 : vector<40x96xi32>
    %cst_3 = arith.constant 1.000000e+00 : f32
    %25 = vector.broadcast %cst_3 : f32 to vector<40x96xf32>
    %26 = arith.select %24, %25, %21 : vector<40x96xi1>, vector<40x96xf32>
    %27 = vector.extract_strided_slice %0 {offsets = [0, 5], sizes = [40, 1], strides = [1, 1]} : vector<40x12xi32> to vector<40x1xi32>
    %28 = vector.broadcast %27 : vector<40x1xi32> to vector<40x96xi32>
    %29 = arith.cmpi eq, %28, %1 : vector<40x96xi32>
    %cst_4 = arith.constant 1.000000e+00 : f32
    %30 = vector.broadcast %cst_4 : f32 to vector<40x96xf32>
    %31 = arith.select %29, %30, %26 : vector<40x96xi1>, vector<40x96xf32>
    %32 = vector.extract_strided_slice %0 {offsets = [0, 6], sizes = [40, 1], strides = [1, 1]} : vector<40x12xi32> to vector<40x1xi32>
    %33 = vector.broadcast %32 : vector<40x1xi32> to vector<40x96xi32>
    %34 = arith.cmpi eq, %33, %1 : vector<40x96xi32>
    %cst_5 = arith.constant 1.000000e+00 : f32
    %35 = vector.broadcast %cst_5 : f32 to vector<40x96xf32>
    %36 = arith.select %34, %35, %31 : vector<40x96xi1>, vector<40x96xf32>
    %37 = vector.extract_strided_slice %0 {offsets = [0, 7], sizes = [40, 1], strides = [1, 1]} : vector<40x12xi32> to vector<40x1xi32>
    %38 = vector.broadcast %37 : vector<40x1xi32> to vector<40x96xi32>
    %39 = arith.cmpi eq, %38, %1 : vector<40x96xi32>
    %cst_6 = arith.constant 1.000000e+00 : f32
    %40 = vector.broadcast %cst_6 : f32 to vector<40x96xf32>
    %41 = arith.select %39, %40, %36 : vector<40x96xi1>, vector<40x96xf32>
    %42 = vector.extract_strided_slice %0 {offsets = [0, 8], sizes = [40, 1], strides = [1, 1]} : vector<40x12xi32> to vector<40x1xi32>
    %43 = vector.broadcast %42 : vector<40x1xi32> to vector<40x96xi32>
    %44 = arith.cmpi eq, %43, %1 : vector<40x96xi32>
    %cst_7 = arith.constant 1.000000e+00 : f32
    %45 = vector.broadcast %cst_7 : f32 to vector<40x96xf32>
    %46 = arith.select %44, %45, %41 : vector<40x96xi1>, vector<40x96xf32>
    %47 = vector.extract_strided_slice %0 {offsets = [0, 9], sizes = [40, 1], strides = [1, 1]} : vector<40x12xi32> to vector<40x1xi32>
    %48 = vector.broadcast %47 : vector<40x1xi32> to vector<40x96xi32>
    %49 = arith.cmpi eq, %48, %1 : vector<40x96xi32>
    %cst_8 = arith.constant 1.000000e+00 : f32
    %50 = vector.broadcast %cst_8 : f32 to vector<40x96xf32>
    %51 = arith.select %49, %50, %46 : vector<40x96xi1>, vector<40x96xf32>
    %52 = vector.extract_strided_slice %0 {offsets = [0, 10], sizes = [40, 1], strides = [1, 1]} : vector<40x12xi32> to vector<40x1xi32>
    %53 = vector.broadcast %52 : vector<40x1xi32> to vector<40x96xi32>
    %54 = arith.cmpi eq, %53, %1 : vector<40x96xi32>
    %cst_9 = arith.constant 1.000000e+00 : f32
    %55 = vector.broadcast %cst_9 : f32 to vector<40x96xf32>
    %56 = arith.select %54, %55, %51 : vector<40x96xi1>, vector<40x96xf32>
    %57 = vector.extract_strided_slice %0 {offsets = [0, 11], sizes = [40, 1], strides = [1, 1]} : vector<40x12xi32> to vector<40x1xi32>
    %58 = vector.broadcast %57 : vector<40x1xi32> to vector<40x96xi32>
    %59 = arith.cmpi eq, %58, %1 : vector<40x96xi32>
    %cst_10 = arith.constant 1.000000e+00 : f32
    %60 = vector.broadcast %cst_10 : f32 to vector<40x96xf32>
    %61 = arith.select %59, %60, %56 : vector<40x96xi1>, vector<40x96xf32>
    %c0_11 = arith.constant 0 : index
    %c0_12 = arith.constant 0 : index
    %62 = vector.load %arg2[%c0_11, %c0_12] : memref<96x256xf32, #tpu.memory_space<vmem>>, vector<96x256xf32>
    %cst_13 = arith.constant dense<0.000000e+00> : vector<40x256xf32>
    %63 = tpu.matmul %61, %62, %cst_13 {dimension_numbers = #tpu.dot_dimension_numbers<[1], [0], [0], [1], [0, 0, 1, 1], [], []>} : vector<40x96xf32>, vector<96x256xf32>, vector<40x256xf32> -> vector<40x256xf32>
    %c0_14 = arith.constant 0 : index
    %c0_15 = arith.constant 0 : index
    %64 = vector.load %arg3[%c0_14, %c0_15] : memref<40x256xf32, #tpu.memory_space<vmem>>, vector<40x256xf32>
    tpu.vector_store %arg3[%c0_14, %c0_15], %63 {strides = array<i32>} : memref<40x256xf32, #tpu.memory_space<vmem>>, vector<40x256xf32>,
    return
  }
  func.func @transform_0(%arg0: i32) -> (i32, i32) {
    %c0_i32 = arith.constant 0 : i32
    %c0_i32_0 = arith.constant 0 : i32
    return %arg0, %c0_i32 : i32, i32
  }
  func.func @transform_1(%arg0: i32) -> (i32, i32) {
    %c0_i32 = arith.constant 0 : i32
    %c0_i32_0 = arith.constant 0 : i32
    %c0_i32_1 = arith.constant 0 : i32
    return %c0_i32, %c0_i32_0 : i32, i32
  }
  func.func @transform_2(%arg0: i32) -> (i32, i32) {
    %c0_i32 = arith.constant 0 : i32
    %c0_i32_0 = arith.constant 0 : i32
    return %arg0, %c0_i32 : i32, i32
  }
}

</mosaic_0001>

<bundles_post_ra>
// kernel: tpu_custom_call.1
= control target key start
LH: loop header
LB: loop body
LE: loop exit
PB: predicated region body
PF: predicated region fallthrough
CT: control target
= control target key end

     0   :  { %7 = vsyncpa [#allocation3], 0  ;;  %s1276_s0 = inlined_call_operand.vmem [shape: s32[80,12], index: 0, kind: input, shape index: {}]   ;;  %s1277_s1 = inlined_call_operand.hbm [shape: f32[96,256], index: 1, kind: input, shape index: {}]   ;;  %s1278_s2 = inlined_call_operand.hbm [shape: f32[80,256], index: 2, kind: output, shape index: {}]  }
   0x1   :  { %8 = vsyncpa [#allocation4], 0 }
   0x2   :  { %10 = vsyncpa [#allocation4 + $0x1], 0  ;;  %s976_s9 = smov 0   ;;  %s978_s10 = smov 0  }
   0x3   :  { %s980_s11 = smov 0   ;;  %s982_s12 = smov 0  }
   0x4 LB: > { %s997_s13 = sadd.s32 4294967295, %s941_s12   ;;  %s679_s14 = sadd.s32 4294967294, %s941_s12   ;;  %s941_s12 = sphi %s982_s12, %s1284_s12   ;;  %s937_s11 = sphi %s980_s11, %s1283_s11   ;;  %s933_s10 = sphi %s978_s10, %s1282_s10   ;;  %s929_s9 = sphi %s976_s9, %s1281_s9  }
   0x5   : > { %s1001_s15 = sadd.s32 1, %s941_s12   ;;  %s70_s16 = sadd.s32 1, %s937_s11 }
   0x6   : > { %s67_s17 = ssub.s32 %s941_s12, %s1001_s15  ;;  %p80_p0 = scmp.ne.s32.totalorder %s937_s11, %s933_s10 }
   0x7   : > { %p68_p1 = scmp.eq.s32.totalorder %s67_s17, 0  ;;  %p81_p2 = scmp.eq.s32.totalorder %s997_s13, 1 }
   0x8   : > { %p86_p3 = scmp.ne.s32.totalorder %s933_s10, %s929_s9  ;;  %p87_p4 = scmp.eq.s32.totalorder %s679_s14, 1 }
   0x9   : > { %s1012_s18 = scalar_select %p68_p1, %s937_s11, %s70_s16  }
   0xa   : > { %p1014_p5 = por %p81_p2, %p80_p0  ;;  %p1018_p6 = por %p87_p4, %p86_p3 }
   0xb   : > { %p680_p7 = scmp.ge.s32.totalorder %s941_s12, 1  ;;  %p94_p8 = scmp.lt.s32.totalorder %s941_s12, 3 }
   0xc   : > { %p747_p9 = scmp.eq.s32.totalorder %s997_s13, 0  ;;  %s105_s23 = sshll.u32 %s1277_s1, 4  ;;  %s106_s23 = int_to_ptr.hbm [resolvable:$true] %s105_s23 }
   0xd   : > { %p95_p10 = pnand %p680_p7, %p94_p8  ;;  %s943_s24 = smov [#allocation2]  }
   0xe   : > { %s107_s25 = sshll.u32 %s943_s24, 4  ;;  %s944_s26 = smov 256   ;;  %s108_s25 = int_to_ptr.vmem [resolvable:$true] %s107_s25 }
   0xf   : > { %p739_p11 = pneg %p95_p10  ;;  %s945_s27 = smov 16  }
  0x10   : > { %132 = sbr.rel (%p95_p10) target bundleno = 483 (0x1e3), region = 28 }
  0x11   : > { %p740_p12 = pnand %p747_p9, %p739_p11 }
  0x13   : > { %742 = dma.hbm_to_vmem [thread:$0]  (!%p740_p12), %s106_s23, 3072, %s108_s25, [#allocation3], %s944_s26, %s944_s26, %s945_s27  }
  0x15   : > { %920 = dma.done.wait (%p747_p9), [#allocation3], 3072  }
  0x16   : > { %922 = vsyncadd (%p747_p9), [#allocation3], 4294964224  ;;  %s155_s28 = smul.u32 5, %s997_s13  ;;  %v946_v0 = vmov 0   ;;  %v947_v5 = vmov 1   ;;  %v948_v7 = vmov 2   ;;  %v167_v15 = vlaneseq }
  0x17   : > { %802 = vset.pattern.permute.xlu2 %v946_v0  ;;  %801 = vset.pattern.permute.xlu1 %v946_v0  ;;  %v949_v8 = vmov 3   ;;  %v950_v9 = vmov 4   ;;  %v951_v10 = vmov 5   ;;  %v952_v11 = vmov 9   ;;  %v496_v61 = vld [vmem:[#allocation2 + $0xb0] sm:$0xff]  ;;  %s152_s5 = sand.u32 1, %s933_s10  }
  0x18   : > { %p156_p13 = scmp.lt.s32.totalorder %s155_s28, 9  ;;  %800 = vset.pattern.permute.xlu0 %v946_v0  ;;  %v953_v12 = vmov 7   ;;  %v954_v13 = vmov 11   ;;  %v955_v14 = vmov 6   ;;  %v1087_v16 = vand.u32 127, %v167_v15  ;;  %708 = vmatpush.msra.mxu2 %v496_v61  ;;  %v494_v0 = vld [vmem:[#allocation2 + $0xa0] sm:$0xff] }
  0x19   : > { %v956_v18 = vmov 8   ;;  %v957_v19 = vmov 0.0   ;;  %v958_v22 = vmov 10   ;;  %518 = vmatpush.msra.mxu0 %v496_v61  ;;  %v484_v15 = vld [vmem:[#allocation2 + $0x50] sm:$0xff]  ;;  %s732_s6 = smul.u32 80, %s152_s5  ;;  %s589_s23 = scalar_lea.sflag [#allocation4], %s152_s5 }
  0x1a   : > { %s1286_s28 = smov (!%p156_p13, %s155_s28), 9  ;;  %709 = vmatpush.msra.mxu2 %v494_v0  ;;  %s707_s8 = smul.u32 80, %s997_s13 }
  0x1b   : > { %s685_s29 = sshll.u32 %s1286_s28, 3  ;;  %519 = vmatpush.msra.mxu0 %v494_v0  ;;  %s154_s7 = scalar_lea.vmem [#allocation5], %s732_s6 }
  0x1c   : > { %s159_s4 = scalar_lea.vmem %s1276_s0, %s685_s29  ;;  %s601_s17 = scalar_lea.hbm %s1278_s2, %s707_s8 }
  0x1d   : > { %v1038_v1 = vld [vmem:[%s159_s4 + $0x20] sm:$0xff]  ;;  %v1040_v2 = vld [vmem:[%s159_s4 + $0x10] sm:$0xff]  ;;  %v1047_v4 = vld [vmem:[%s159_s4 + $0x18] sm:$0xff]  ;;  %s602_s21 = sshll.u32 %s154_s7, 4  ;;  %s604_s22 = sshll.u32 %s601_s17, 4  ;;  %s603_s21 = int_to_ptr.vmem [resolvable:$true] %s602_s21  ;;  %s605_s22 = int_to_ptr.hbm [resolvable:$true] %s604_s22 }
  0x1e   : > { %182 = vperm.xlu2 %802, %v1038_v1   ;;  %176 = vperm.xlu1 %801, %v1040_v2   ;;  %v1044_v3 = vld [vmem:[%s159_s4] sm:$0xff]  ;;  %v1051_v6 = vld [vmem:[%s159_s4 + $0x8] sm:$0xff]  ;;  %s889_s24 = sshra.s32 %s605_s22, 4  ;;  %s895_s27 = scalar_lea.hbm %s1278_s2, 160  ;;  %s890_s24 = int_to_ptr.hbm [resolvable:$true] %s889_s24 }
  0x1f   : > { %170 = vperm.xlu0 %800, %v1044_v3   ;;  %s891_s25 = scalar_lea.hbm %s890_s24, 80  ;;  %p896_p3 = scmp.lt.s32.totalorder %s890_s24, %s1278_s2 }
  0x20   : > { %p892_p0 = scmp.ne.s32.totalorder %s890_s24, %s891_s25  ;;  %p897_p4 = scmp.lt.s32.totalorder %s895_s27, %s891_s25 }
  0x22   : > { %p893_p1 = pnand %p892_p0, %p1014_p5  ;;  %p898_p7 = por %p897_p4, %p896_p3 }
  0x24   : > { %p894_p2 = pneg %p893_p1 }
  0x26   : > { %803 = vset.pattern.permute.xlu2 %v947_v5  ;;  %179 = vperm.xlu1 %801, %v1047_v4   ;;  %p899_p8 = pnand %p898_p7, %p894_p2 }
  0x27   : > { %200 = vperm.xlu2 %803, %v1044_v3   ;;  %173 = vperm.xlu0 %800, %v1051_v6  }
  0x2e   : > { %805 = vset.pattern.permute.xlu1 %v947_v5 }
  0x2f   : > { %206 = vperm.xlu1 %805, %v1040_v2   ;;  %209 = vperm.xlu2 %803, %v1047_v4  }
  0x30   : > { %804 = vset.pattern.permute.xlu0 %v947_v5 }
  0x31   : > { %203 = vperm.xlu0 %804, %v1051_v6  }
  0x37   : > { %212 = vperm.xlu1 %805, %v1038_v1   ;;  %806 = vset.pattern.permute.xlu2 %v948_v7 }
  0x38   : > { %225 = vperm.xlu2 %806, %v1044_v3  }
  0x39   : > { %807 = vset.pattern.permute.xlu0 %v948_v7 }
  0x3a   : > { %228 = vperm.xlu0 %807, %v1051_v6  }
  0x3f   : > { %808 = vset.pattern.permute.xlu1 %v948_v7  ;;  %v490_v7 = vld [vmem:[#allocation2 + $0x80] sm:$0xff] }
  0x40   : > { %231 = vperm.xlu1 %808, %v1040_v2   ;;  %234 = vperm.xlu2 %806, %v1047_v4  }
  0x42   : > { %810 = vset.pattern.permute.xlu0 %v949_v8 }
  0x43   : > { %253 = vperm.xlu0 %810, %v1051_v6  }
  0x48   : > { %237 = vperm.xlu1 %808, %v1038_v1   ;;  %809 = vset.pattern.permute.xlu2 %v949_v8 }
  0x49   : > { %250 = vperm.xlu2 %809, %v1044_v3  }
  0x4b   : > { %813 = vset.pattern.permute.xlu0 %v950_v9 }
  0x4c   : > { %278 = vperm.xlu0 %813, %v1051_v6  }
  0x50   : > { %811 = vset.pattern.permute.xlu1 %v949_v8 }
  0x51   : > { %256 = vperm.xlu1 %811, %v1040_v2   ;;  %259 = vperm.xlu2 %809, %v1047_v4  }
  0x54   : > { %816 = vset.pattern.permute.xlu0 %v951_v10 }
  0x55   : > { %303 = vperm.xlu0 %816, %v1051_v6  }
  0x59   : > { %262 = vperm.xlu1 %811, %v1038_v1   ;;  %812 = vset.pattern.permute.xlu2 %v950_v9 }
  0x5a   : > { %275 = vperm.xlu2 %812, %v1044_v3  }
  0x5d   : > { %821 = vset.pattern.permute.xlu0 %v952_v11 }
  0x5e   : > { %406 = vperm.xlu0 %821, %v1040_v2  }
  0x61   : > { %814 = vset.pattern.permute.xlu1 %v950_v9  ;;  %v488_v9 = vld [vmem:[#allocation2 + $0x70] sm:$0xff] }
  0x62   : > { %281 = vperm.xlu1 %814, %v1040_v2   ;;  %284 = vperm.xlu2 %812, %v1047_v4  }
  0x66   : > { %826 = vset.pattern.permute.xlu0 %v953_v12 }
  0x67   : > { %350 = vperm.xlu0 %826, %v1044_v3  }
  0x6a   : > { %287 = vperm.xlu1 %814, %v1038_v1   ;;  %815 = vset.pattern.permute.xlu2 %v951_v10 }
  0x6b   : > { %300 = vperm.xlu2 %815, %v1044_v3  }
  0x6f   : > { %833 = vset.pattern.permute.xlu0 %v954_v13 }
  0x70   : > { %459 = vperm.xlu0 %833, %v1047_v4  }
  0x72   : > { %817 = vset.pattern.permute.xlu1 %v951_v10 }
  0x73   : > { %306 = vperm.xlu1 %817, %v1040_v2   ;;  %818 = vset.pattern.permute.xlu2 %v955_v14 }
  0x74   : > { %331 = vperm.xlu2 %818, %v1040_v2  }
  0x78   : > { %v183_v17 = vpop.permute.xlu2 %182  ;;  %834 = vset.pattern.permute.xlu0 %v956_v18 }
  0x79   : > { %vm188_vm0 = vcmp.eq.s32.totalorder %v183_v17, %v1087_v16  ;;  %384 = vperm.xlu0 %834, %v1047_v4   ;;  %v482_v17 = vld [vmem:[#allocation2 + $0x40] sm:$0xff] }
  0x7a   : > { %v1092_v20 = vsel %vm188_vm0, 1.0, %v957_v19 }
  0x7b   : > { %819 = vset.pattern.permute.xlu1 %v953_v12 }
  0x7c   : > { %356 = vperm.xlu1 %819, %v1040_v2   ;;  %820 = vset.pattern.permute.xlu2 %v956_v18 }
  0x7d   : > { %381 = vperm.xlu2 %820, %v1040_v2  }
  0x81   : > { %v201_v21 = vpop.permute.xlu2 %200  ;;  %378 = vperm.xlu0 %834, %v1051_v6  }
  0x82   : > { %vm214_vm1 = vcmp.eq.s32.totalorder %v201_v21, %v1087_v16  ;;  %v476_v21 = vld [vmem:[#allocation2 + $0x10] sm:$0xff] }
  0x84   : > { %822 = vset.pattern.permute.xlu1 %v958_v22 }
  0x85   : > { %431 = vperm.xlu1 %822, %v1040_v2   ;;  %823 = vset.pattern.permute.xlu2 %v954_v13 }
  0x86   : > { %456 = vperm.xlu2 %823, %v1040_v2  }
  0x89   : > { %v210_v23 = vpop.permute.xlu2 %209  ;;  %842 = vset.pattern.permute.xlu0 %v952_v11 }
  0x8a   : > { %412 = vperm.xlu0 %842, %v1038_v1   ;;  %vm217_vm4 = vcmp.eq.s32.totalorder %v210_v23, %v1087_v16 }
  0x8d   : > { %824 = vset.pattern.permute.xlu1 %v955_v14 }
  0x8e   : > { %325 = vperm.xlu1 %824, %v1044_v3   ;;  %825 = vset.pattern.permute.xlu2 %v951_v10 }
  0x8f   : > { %309 = vperm.xlu2 %825, %v1047_v4  }
  0x90   : > { %v177_v24 = vpop.permute.xlu1 %176 }
  0x91   : > { %v171_v25 = vpop.permute.xlu0 %170  ;;  %vm186_vm7 = vcmp.eq.s32.totalorder %v177_v24, %v1087_v16  ;;  %v474_v24 = vld [vmem:[#allocation2] sm:$0xff] }
  0x92   : > { %v226_v26 = vpop.permute.xlu2 %225  ;;  %vm184_vm2 = vcmp.eq.s32.totalorder %v171_v25, %v1087_v16  ;;  %844 = vset.pattern.permute.xlu0 %v954_v13  ;;  %v688_v38 = vsel %vm186_vm7, 1.0, %v957_v19  ;;  %v497_v25 = vld [vmem:[#allocation2 + $0xb8] sm:$0xff] }
  0x93   : > { %vm239_vm3 = vcmp.eq.s32.totalorder %v226_v26, %v1087_v16  ;;  %v686_v27 = vsel %vm184_vm2, 1.0, %v957_v19  ;;  %720 = vmatpush.msra.mxu3 %v497_v25  ;;  %550 = vmatpush.msra.mxu1 %v497_v25 }
  0x94   : > { %v219_v28 = vsel %vm214_vm1, 1.0, %v686_v27  ;;  %v495_v27 = vld [vmem:[#allocation2 + $0xa8] sm:$0xff] }
  0x95   : > { %v244_v29 = vsel %vm239_vm3, 1.0, %v219_v28  ;;  %721 = vmatpush.msra.mxu3 %v495_v27  ;;  %551 = vmatpush.msra.mxu1 %v495_v27  ;;  %v493_v28 = vld [vmem:[#allocation2 + $0x98] sm:$0xff] }
  0x96   : > { %334 = vperm.xlu1 %824, %v1047_v4  }
  0x97   : > { %827 = vset.pattern.permute.xlu2 %v956_v18  ;;  %722 = vmatpush.msra.mxu3 %v493_v28 }
  0x98   : > { %v180_v30 = vpop.permute.xlu1 %179  ;;  %375 = vperm.xlu2 %827, %v1044_v3   ;;  %552 = vmatpush.msra.mxu1 %v493_v28 }
  0x99   : > { %vm187_vm5 = vcmp.eq.s32.totalorder %v180_v30, %v1087_v16  ;;  %v174_v35 = vpop.permute.xlu0 %173 }
  0x9a   : > { %v689_v31 = vsel %vm187_vm5, 1.0, %v957_v19  ;;  %v235_v32 = vpop.permute.xlu2 %234  ;;  %vm185_vm8 = vcmp.eq.s32.totalorder %v174_v35, %v1087_v16  ;;  %v483_v35 = vld [vmem:[#allocation2 + $0x48] sm:$0xff] }
  0x9b   : > { %v222_v33 = vsel %vm217_vm4, 1.0, %v689_v31  ;;  %vm242_vm6 = vcmp.eq.s32.totalorder %v235_v32, %v1087_v16  ;;  %v687_v36 = vsel %vm185_vm8, 1.0, %v957_v19  ;;  %v480_v19 = vld [vmem:[#allocation2 + $0x30] sm:$0xff]  ;;  %v485_v31 = vld [vmem:[#allocation2 + $0x58] sm:$0xff] }
  0x9c   : > { %v247_v34 = vsel %vm242_vm6, 1.0, %v222_v33 }
  0x9e   : > { %828 = vset.pattern.permute.xlu1 %v953_v12 }
  0x9f   : > { %359 = vperm.xlu1 %828, %v1047_v4  }
  0xa0   : > { %829 = vset.pattern.permute.xlu2 %v952_v11 }
  0xa1   : > { %v207_v37 = vpop.permute.xlu1 %206  ;;  %400 = vperm.xlu2 %829, %v1044_v3  }
  0xa2   : > { %vm216_vm9 = vcmp.eq.s32.totalorder %v207_v37, %v1087_v16 }
  0xa3   : > { %v1126_v39 = vsel %vm216_vm9, 1.0, %v688_v38  ;;  %v251_v40 = vpop.permute.xlu2 %250  ;;  %v204_v42 = vpop.permute.xlu0 %203  ;;  %v481_v38 = vld [vmem:[#allocation2 + $0x38] sm:$0xff] }
  0xa4   : > { %vm264_vm10 = vcmp.eq.s32.totalorder %v251_v40, %v1087_v16  ;;  %vm215_vm11 = vcmp.eq.s32.totalorder %v204_v42, %v1087_v16  ;;  %v479_v42 = vld [vmem:[#allocation2 + $0x28] sm:$0xff] }
  0xa5   : > { %v269_v41 = vsel %vm264_vm10, 1.0, %v244_v29  ;;  %v220_v44 = vsel %vm215_vm11, 1.0, %v687_v36  ;;  %v491_v29 = vld [vmem:[#allocation2 + $0x88] sm:$0xff] }
  0xa6   : > { %723 = vmatpush.msra.mxu3 %v491_v29  ;;  %553 = vmatpush.msra.mxu1 %v491_v29 }
  0xa7   : > { %830 = vset.pattern.permute.xlu1 %v958_v22 }
  0xa8   : > { %425 = vperm.xlu1 %830, %v1044_v3  }
  0xa9   : > { %v213_v43 = vpop.permute.xlu1 %212  ;;  %409 = vperm.xlu2 %829, %v1047_v4  }
  0xaa   : > { %vm218_vm12 = vcmp.eq.s32.totalorder %v213_v43, %v1087_v16 }
  0xab   : > { %v223_v45 = vsel %vm218_vm12, 1.0, %v1092_v20  ;;  %v260_v46 = vpop.permute.xlu2 %259  ;;  %v478_v20 = vld [vmem:[#allocation2 + $0x20] sm:$0xff] }
  0xac   : > { %vm267_vm13 = vcmp.eq.s32.totalorder %v260_v46, %v1087_v16  ;;  %v229_v48 = vpop.permute.xlu0 %228  ;;  %v475_v46 = vld [vmem:[#allocation2 + $0x8] sm:$0xff] }
  0xad   : > { %v272_v47 = vsel %vm267_vm13, 1.0, %v247_v34  ;;  %vm240_vm14 = vcmp.eq.s32.totalorder %v229_v48, %v1087_v16 }
  0xae   : > { %v245_v49 = vsel %vm240_vm14, 1.0, %v220_v44  ;;  %v477_v44 = vld [vmem:[#allocation2 + $0x18] sm:$0xff] }
  0xb0   : > { %831 = vset.pattern.permute.xlu1 %v954_v13 }
  0xb1   : > { %450 = vperm.xlu1 %831, %v1044_v3   ;;  %832 = vset.pattern.permute.xlu2 %v958_v22  ;;  %v492_v3 = vld [vmem:[#allocation2 + $0x90] sm:$0xff] }
  0xb2   : > { %v1140_v50 = vpop.permute.xlu1 %231  ;;  %434 = vperm.xlu2 %832, %v1047_v4   ;;  %710 = vmatpush.msra.mxu2 %v492_v3 }
  0xb3   : > { %520 = vmatpush.msra.mxu0 %v492_v3  ;;  %vm241_vm8 = vcmp.eq.s32.totalorder %v1140_v50, %v1087_v16 }
  0xb4   : > { %v276_v51 = vpop.permute.xlu2 %275  ;;  %711 = vmatpush.msra.mxu2 %v490_v7  ;;  %v246_v32 = vsel %vm241_vm8, 1.0, %v1126_v39 }
  0xb5   : > { %vm289_vm15 = vcmp.eq.s32.totalorder %v276_v51, %v1087_v16  ;;  %v254_v53 = vpop.permute.xlu0 %253  ;;  %521 = vmatpush.msra.mxu0 %v490_v7 }
  0xb6   : > { %v294_v52 = vsel %vm289_vm15, 1.0, %v269_v41  ;;  %vm265_vm0 = vcmp.eq.s32.totalorder %v254_v53, %v1087_v16  ;;  %712 = vmatpush.msra.mxu2 %v488_v9 }
  0xb7   : > { %v270_v54 = vsel %vm265_vm0, 1.0, %v245_v49  ;;  %522 = vmatpush.msra.mxu0 %v488_v9 }
  0xb9   : > { %835 = vset.pattern.permute.xlu1 %v955_v14 }
  0xba   : > { %v238_v55 = vpop.permute.xlu1 %237  ;;  %328 = vperm.xlu1 %835, %v1051_v6   ;;  %836 = vset.pattern.permute.xlu2 %v951_v10  ;;  %v486_v10 = vld [vmem:[#allocation2 + $0x60] sm:$0xff] }
  0xbb   : > { %vm243_vm1 = vcmp.eq.s32.totalorder %v238_v55, %v1087_v16  ;;  %312 = vperm.xlu2 %836, %v1038_v1   ;;  %713 = vmatpush.msra.mxu2 %v486_v10 }
  0xbc   : > { %v248_v56 = vsel %vm243_vm1, 1.0, %v223_v45  ;;  %v285_v57 = vpop.permute.xlu2 %284  ;;  %523 = vmatpush.msra.mxu0 %v486_v10 }
  0xbd   : > { %vm292_vm2 = vcmp.eq.s32.totalorder %v285_v57, %v1087_v16  ;;  %714 = vmatpush.msra.mxu2 %v484_v15 }
  0xbe   : > { %v1151_v58 = vsel %vm292_vm2, 1.0, %v272_v47  ;;  %v279_v59 = vpop.permute.xlu0 %278  ;;  %524 = vmatpush.msra.mxu0 %v484_v15  ;;  %vm498_vm2 = vcmask 785408  }
  0xbf   : > { %vm290_vm3 = vcmp.eq.s32.totalorder %v279_v59, %v1087_v16  ;;  %715 = vmatpush.msra.mxu2 %v482_v17 }
  0xc0   : > { %v295_v60 = vsel %vm290_vm3, 1.0, %v270_v54  ;;  %525 = vmatpush.msra.mxu0 %v482_v17 }
  0xc1   : > { %716 = vmatpush.msra.mxu2 %v480_v19 }
  0xc2   : > { %837 = vset.pattern.permute.xlu1 %v953_v12  ;;  %526 = vmatpush.msra.mxu0 %v480_v19 }
  0xc3   : > { %v1155_v62 = vpop.permute.xlu1 %256  ;;  %353 = vperm.xlu1 %837, %v1051_v6   ;;  %838 = vset.pattern.permute.xlu2 %v955_v14 }
  0xc4   : > { %337 = vperm.xlu2 %838, %v1038_v1   ;;  %717 = vmatpush.msra.mxu2 %v478_v20  ;;  %vm266_vm9 = vcmp.eq.s32.totalorder %v1155_v62, %v1087_v16 }
  0xc5   : > { %v301_v63 = vpop.permute.xlu2 %300  ;;  %527 = vmatpush.msra.mxu0 %v478_v20 }
  0xc6   : > { %vm314_vm4 = vcmp.eq.s32.totalorder %v301_v63, %v1087_v16  ;;  %718 = vmatpush.msra.mxu2 %v476_v21 }
  0xc7   : > { %v1161_v2 = vsel %vm314_vm4, 1.0, %v294_v52  ;;  %v304_v4 = vpop.permute.xlu0 %303  ;;  %528 = vmatpush.msra.mxu0 %v476_v21 }
  0xc8   : > { %vm315_vm5 = vcmp.eq.s32.totalorder %v304_v4, %v1087_v16  ;;  %719 = vmatpush.msra.mxu2 %v474_v24 }
  0xc9   : > { %v1164_v5 = vsel %vm315_vm5, 1.0, %v295_v60  ;;  %529 = vmatpush.msra.mxu0 %v474_v24 }
  0xcb   : > { %v263_v8 = vpop.permute.xlu1 %262  ;;  %362 = vperm.xlu1 %837, %v1038_v1  }
  0xcc   : > { %vm268_vm6 = vcmp.eq.s32.totalorder %v263_v8, %v1087_v16  ;;  %839 = vset.pattern.permute.xlu2 %v952_v11 }
  0xcd   : > { %v273_v12 = vsel %vm268_vm6, 1.0, %v248_v56  ;;  %403 = vperm.xlu2 %839, %v1051_v6  }
  0xce   : > { %v1170_v14 = vpop.permute.xlu2 %331 }
  0xcf   : > { %vm341_vm12 = vcmp.eq.s32.totalorder %v1170_v14, %v1087_v16 }
  0xd0   : > { %v407_v41 = vpop.permute.xlu0 %406 }
  0xd1   : > { %vm416_vm15 = vcmp.eq.s32.totalorder %v407_v41, %v1087_v16 }
  0xd3   : > { %840 = vset.pattern.permute.xlu1 %v956_v18 }
  0xd4   : > { %v282_v11 = vpop.permute.xlu1 %281  ;;  %387 = vperm.xlu1 %840, %v1038_v1  }
  0xd5   : > { %841 = vset.pattern.permute.xlu2 %v958_v22  ;;  %vm291_vm10 = vcmp.eq.s32.totalorder %v282_v11, %v1087_v16 }
  0xd6   : > { %428 = vperm.xlu2 %841, %v1051_v6  }
  0xd7   : > { %v1176_v23 = vpop.permute.xlu2 %381 }
  0xd8   : > { %vm391_vm14 = vcmp.eq.s32.totalorder %v1176_v23, %v1087_v16 }
  0xd9   : > { %v351_v51 = vpop.permute.xlu0 %350 }
  0xdc   : > { %v288_v18 = vpop.permute.xlu1 %287  ;;  %843 = vset.pattern.permute.xlu1 %v954_v13  ;;  %v487_v13 = vld [vmem:[#allocation2 + $0x68] sm:$0xff] }
  0xdd   : > { %vm293_vm7 = vcmp.eq.s32.totalorder %v288_v18, %v1087_v16  ;;  %453 = vperm.xlu1 %843, %v1051_v6   ;;  %v489_v6 = vld [vmem:[#allocation2 + $0x78] sm:$0xff] }
  0xde   : > { %v1181_v22 = vsel %vm293_vm7, 1.0, %v273_v12  ;;  %437 = vperm.xlu2 %841, %v1038_v1   ;;  %724 = vmatpush.msra.mxu3 %v489_v6 }
  0xdf   : > { %554 = vmatpush.msra.mxu1 %v489_v6 }
  0xe0   : > { %v457_v26 = vpop.permute.xlu2 %456  ;;  %725 = vmatpush.msra.mxu3 %v487_v13 }
  0xe1   : > { %555 = vmatpush.msra.mxu1 %v487_v13  ;;  %vm466_vm0 = vcmp.eq.s32.totalorder %v457_v26, %v1087_v16 }
  0xe2   : > { %726 = vmatpush.msra.mxu3 %v485_v31  ;;  %v460_v54 = vpop.permute.xlu0 %459 }
  0xe3   : > { %556 = vmatpush.msra.mxu1 %v485_v31 }
  0xe4   : > { %727 = vmatpush.msra.mxu3 %v483_v35 }
  0xe5   : > { %v307_v30 = vpop.permute.xlu1 %306  ;;  %462 = vperm.xlu1 %843, %v1038_v1   ;;  %v271_v1 = vsel %vm266_vm9, 1.0, %v246_v32  ;;  %557 = vmatpush.msra.mxu1 %v483_v35  ;;  %vm467_vm9 = vcmp.eq.s32.totalorder %v460_v54, %v1087_v16 }
  0xe6   : > { %vm316_vm11 = vcmp.eq.s32.totalorder %v307_v30, %v1087_v16  ;;  %v296_v34 = vsel %vm291_vm10, 1.0, %v271_v1  ;;  %728 = vmatpush.msra.mxu3 %v481_v38 }
  0xe7   : > { %v321_v36 = vsel %vm316_vm11, 1.0, %v296_v34  ;;  %558 = vmatpush.msra.mxu1 %v481_v38  ;;  %vm364_vm11 = vcmp.eq.s32.totalorder %v351_v51, %v1087_v16 }
  0xe8   : > { %v346_v39 = vsel %vm341_vm12, 1.0, %v321_v36  ;;  %729 = vmatpush.msra.mxu3 %v479_v42 }
  0xe9   : > { %v310_v33 = vpop.permute.xlu2 %309  ;;  %559 = vmatpush.msra.mxu1 %v479_v42 }
  0xea   : > { %730 = vmatpush.msra.mxu3 %v477_v44  ;;  %vm317_vm3 = vcmp.eq.s32.totalorder %v310_v33, %v1087_v16 }
  0xeb   : > { %560 = vmatpush.msra.mxu1 %v477_v44  ;;  %v385_v57 = vpop.permute.xlu0 %384  ;;  %v322_v59 = vsel %vm317_vm3, 1.0, %v1151_v58 }
  0xec   : > { %731 = vmatpush.msra.mxu3 %v475_v46  ;;  %vm392_vm5 = vcmp.eq.s32.totalorder %v385_v57, %v1087_v16 }
  0xed   : > { %561 = vmatpush.msra.mxu1 %v475_v46 }
  0xee   : > { %v357_v37 = vpop.permute.xlu1 %356 }
  0xef   : > { %vm366_vm13 = vcmp.eq.s32.totalorder %v357_v37, %v1087_v16 }
  0xf0   : > { %v371_v40 = vsel %vm366_vm13, 1.0, %v346_v39 }
  0xf1   : > { %v396_v45 = vsel %vm391_vm14, 1.0, %v371_v40 }
  0xf2   : > { %v376_v43 = vpop.permute.xlu2 %375  ;;  %v421_v48 = vsel %vm416_vm15, 1.0, %v396_v45 }
  0xf3   : > { %vm389_vm12 = vcmp.eq.s32.totalorder %v376_v43, %v1087_v16  ;;  %v379_v24 = vpop.permute.xlu0 %378 }
  0xf4   : > { %vm390_vm3 = vcmp.eq.s32.totalorder %v379_v24, %v1087_v16 }
  0xf7   : > { %v432_v47 = vpop.permute.xlu1 %431 }
  0xf8   : > { %vm441_vm1 = vcmp.eq.s32.totalorder %v432_v47, %v1087_v16 }
  0xf9   : > { %v446_v49 = vsel %vm441_vm1, 1.0, %v421_v48 }
  0xfa   : > { %v1200_v50 = vsel %vm466_vm0, 1.0, %v446_v49 }
  0xfb   : > { %693 = vmatmul.msk.f32.vlgmr.msra.gmra.mxu2 %vm498_vm2, %v1200_v50  ;;  %v401_v52 = vpop.permute.xlu2 %400 }
  0xfc   : > { %vm414_vm13 = vcmp.eq.s32.totalorder %v401_v52, %v1087_v16 }
 0x100   : > { %v326_v53 = vpop.permute.xlu1 %325 }
 0x101   : > { %vm339_vm10 = vcmp.eq.s32.totalorder %v326_v53, %v1087_v16 }
 0x102   : > { %v344_v7 = vsel %vm339_vm10, 1.0, %v1161_v2 }
 0x103   : > { %v410_v55 = vpop.permute.xlu2 %409  ;;  %v369_v9 = vsel %vm364_vm11, 1.0, %v344_v7 }
 0x104   : > { %vm417_vm6 = vcmp.eq.s32.totalorder %v410_v55, %v1087_v16  ;;  %v394_v10 = vsel %vm389_vm12, 1.0, %v369_v9 }
 0x105   : > { %v419_v12 = vsel %vm414_vm13, 1.0, %v394_v10 }
 0x108   : > { %v335_v56 = vpop.permute.xlu1 %334 }
 0x109   : > { %vm342_vm4 = vcmp.eq.s32.totalorder %v335_v56, %v1087_v16 }
 0x10a   : > { %v347_v61 = vsel %vm342_vm4, 1.0, %v322_v59 }
 0x10c   : > { %v435_v62 = vpop.permute.xlu2 %434 }
 0x10d   : > { %vm442_vm8 = vcmp.eq.s32.totalorder %v435_v62, %v1087_v16 }
 0x111   : > { %v360_v60 = vpop.permute.xlu1 %359 }
 0x112   : > { %vm367_vm7 = vcmp.eq.s32.totalorder %v360_v60, %v1087_v16 }
 0x113   : > { %v372_v63 = vsel %vm367_vm7, 1.0, %v347_v61 }
 0x114   : > { %v397_v0 = vsel %vm392_vm5, 1.0, %v372_v63 }
 0x115   : > { %v422_v3 = vsel %vm417_vm6, 1.0, %v397_v0  ;;  %v313_v19 = vpop.permute.xlu2 %312 }
 0x116   : > { %v447_v4 = vsel %vm442_vm8, 1.0, %v422_v3  ;;  %vm318_vm5 = vcmp.eq.s32.totalorder %v313_v19, %v1087_v16 }
 0x117   : > { %v472_v58 = vsel %vm467_vm9, 1.0, %v447_v4  ;;  %v323_v30 = vsel %vm318_vm5, 1.0, %v1181_v22 }
 0x118   : > { %694 = vmatmul.msk.f32.gmra.mxu2 %vm498_vm2, %v472_v58  ;;  %699 = vmatmul.msk.f32.vlgmr.msra.gmra.mxu3 %vm498_vm2, %v472_v58 }
 0x11a   : > { %v426_v8 = vpop.permute.xlu1 %425 }
 0x11b   : > { %vm439_vm14 = vcmp.eq.s32.totalorder %v426_v8, %v1087_v16 }
 0x11c   : > { %v444_v15 = vsel %vm439_vm14, 1.0, %v419_v12 }
 0x11e   : > { %v338_v11 = vpop.permute.xlu2 %337 }
 0x11f   : > { %vm343_vm6 = vcmp.eq.s32.totalorder %v338_v11, %v1087_v16 }
 0x120   : > { %v348_v13 = vsel %vm343_vm6, 1.0, %v323_v30 }
 0x123   : > { %v451_v14 = vpop.permute.xlu1 %450 }
 0x124   : > { %vm464_vm15 = vcmp.eq.s32.totalorder %v451_v14, %v1087_v16 }
 0x125   : > { %v469_v17 = vsel %vm464_vm15, 1.0, %v444_v15 }
 0x126   : > { %691 = vmatmul.msk.f32.vlgmr.msra.gmra.mxu0 %vm498_vm2, %v469_v17  ;;  %696 = vmatmul.msk.f32.vlgmr.msra.gmra.mxu1 %vm498_vm2, %v469_v17 }
 0x127   : > { %v404_v23 = vpop.permute.xlu2 %403 }
 0x128   : > { %vm415_vm4 = vcmp.eq.s32.totalorder %v404_v23, %v1087_v16 }
 0x12c   : > { %v329_v2 = vpop.permute.xlu1 %328 }
 0x12d   : > { %vm340_vm0 = vcmp.eq.s32.totalorder %v329_v2, %v1087_v16 }
 0x12e   : > { %v345_v18 = vsel %vm340_vm0, 1.0, %v1164_v5  ;;  %v413_v5 = vpop.permute.xlu0 %412 }
 0x12f   : > { %vm418_vm11 = vcmp.eq.s32.totalorder %v413_v5, %v1087_v16 }
 0x130   : > { %v429_v28 = vpop.permute.xlu2 %428 }
 0x131   : > { %vm440_vm7 = vcmp.eq.s32.totalorder %v429_v28, %v1087_v16 }
 0x135   : > { %v354_v20 = vpop.permute.xlu1 %353 }
 0x136   : > { %vm365_vm1 = vcmp.eq.s32.totalorder %v354_v20, %v1087_v16 }
 0x137   : > { %v370_v26 = vsel %vm365_vm1, 1.0, %v345_v18 }
 0x138   : > { %v395_v27 = vsel %vm390_vm3, 1.0, %v370_v26  ;;  %v438_v34 = vpop.permute.xlu2 %437 }
 0x139   : > { %v420_v29 = vsel %vm415_vm4, 1.0, %v395_v27  ;;  %vm443_vm12 = vcmp.eq.s32.totalorder %v438_v34, %v1087_v16 }
 0x13a   : > { %v445_v31 = vsel %vm440_vm7, 1.0, %v420_v29 }
 0x13d   : > { %v363_v21 = vpop.permute.xlu1 %362 }
 0x13e   : > { %vm368_vm8 = vcmp.eq.s32.totalorder %v363_v21, %v1087_v16 }
 0x13f   : > { %v373_v32 = vsel %vm368_vm8, 1.0, %v348_v13 }
 0x146   : > { %v388_v25 = vpop.permute.xlu1 %387 }
 0x147   : > { %vm393_vm9 = vcmp.eq.s32.totalorder %v388_v25, %v1087_v16 }
 0x148   : > { %v398_v33 = vsel %vm393_vm9, 1.0, %v373_v32 }
 0x149   : > { %v423_v22 = vsel %vm418_vm11, 1.0, %v398_v33 }
 0x14a   : > { %v448_v36 = vsel %vm443_vm12, 1.0, %v423_v22 }
 0x14f   : > { %v454_v6 = vpop.permute.xlu1 %453 }
 0x150   : > { %vm465_vm10 = vcmp.eq.s32.totalorder %v454_v6, %v1087_v16 }
 0x151   : > { %v470_v1 = vsel %vm465_vm10, 1.0, %v445_v31 }
 0x152   : > { %692 = vmatmul.msk.f32.gmra.mxu0 %vm498_vm2, %v470_v1  ;;  %697 = vmatmul.msk.f32.gmra.mxu1 %vm498_vm2, %v470_v1 }
 0x157   : > { %v463_v35 = vpop.permute.xlu1 %462 }
 0x158   : > { %vm468_vm13 = vcmp.eq.s32.totalorder %v463_v35, %v1087_v16 }
 0x159   : > { %v473_v37 = vsel %vm468_vm13, 1.0, %v448_v36 }
 0x15a   : > { %695 = vmatmul.msk.f32.gmra.mxu2 %vm498_vm2, %v473_v37  ;;  %698 = vmatmul.msk.f32.gmra.mxu1 %vm498_vm2, %v1200_v50 }
 0x15b   : > { %700 = vmatmul.msk.f32.gmra.mxu3 %vm498_vm2, %v473_v37 }
 0x17e   : > { %v537_v38 = vpop.f32.mrf.mxu2 }
 0x17f   : > { %582 = vst [vmem:[%s154_s7 + $0x20] sm:$0xff] %v537_v38 }
 0x19b   : > { %v540_v39 = vpop.f32.mrf.mxu2  ;;  %v572_v40 = vpop.f32.mrf.mxu3 }
 0x19c   : > { %584 = vst [vmem:[%s154_s7 + $0x30] sm:$0xff] %v540_v39 }
 0x19d   : > { %585 = vst [vmem:[%s154_s7 + $0x38] sm:$0xff] %v572_v40 }
 0x1a3   : > { %v531_v41 = vpop.f32.mrf.mxu0  ;;  %v563_v16 = vpop.f32.mrf.mxu1 }
 0x1a4   : > { %578 = vst [vmem:[%s154_s7] sm:$0xff] %v531_v41 }
 0x1a5   : > { %579 = vst [vmem:[%s154_s7 + $0x8] sm:$0xff] %v563_v16 }
 0x1cf   : > { %v534_v42 = vpop.f32.mrf.mxu0  ;;  %v566_v43 = vpop.f32.mrf.mxu1 }
 0x1d0   : > { %580 = vst [vmem:[%s154_s7 + $0x10] sm:$0xff] %v534_v42 }
 0x1d1   : > { %581 = vst [vmem:[%s154_s7 + $0x18] sm:$0xff] %v566_v43 }
 0x1d7   : > { %v569_v44 = vpop.f32.mrf.mxu1 }
 0x1d8   : > { %583 = vst [vmem:[%s154_s7 + $0x28] sm:$0xff] %v569_v44 }
 0x1dd   : > { %v543_v45 = vpop.f32.mrf.mxu2 }
 0x1de   : > { %586 = vst [vmem:[%s154_s7 + $0x40] sm:$0xff] %v543_v45  ;;  %v575_v46 = vpop.f32.mrf.mxu3 }
 0x1df   : > { %587 = vst [vmem:[%s154_s7 + $0x48] sm:$0xff] %v575_v46 }
 0x1e0   : > { %902 = shalt.err (!%p899_p8)
}
 0x1e1   : > { %s959_s30 = smov 256   ;;  %s960_s3 = smov 16  }
 0x1e2   : > { %737 = dma.vmem_to_hbm [thread:$0]  (%p1014_p5), %s603_s21, 1280, %s605_s22, %s589_s23, %s959_s30, %s959_s30, %s960_s3  }
 0x1e3 PF: > { %p749_p9 = scmp.ge.s32.totalorder %s941_s12, 2  ;;  %s619_s4 = sand.u32 1, %s929_s9  }
 0x1e4   : > { %s620_s5 = scalar_lea.sflag [#allocation4], %s619_s4 }
 0x1e5   : > { %p744_p10 = pnand %p749_p9, %p1018_p6 }
 0x1e7   : > { %p745_p11 = pneg %p744_p10 }
 0x1e9   : > { %924 = dma.done.wait (%p745_p11), %s620_s5, 1280  }
 0x1ea   : > { %926 = vsyncadd (%p745_p11), %s620_s5, 4294966016  ;;  %p13_p12 = scmp.ge.s32.totalorder %s1001_s15, 4   ;;  %s1281_s9 = smov %s933_s10 }
 0x1eb   : > { %s1282_s10 = smov %s937_s11  ;;  %s1283_s11 = smov %s1012_s18 }
 0x1ec   : > { %s1284_s12 = smov %s1001_s15  ;;  %15 = sbr.rel (!%p13_p12) target bundleno = 4 (0x4), region = 68 }
 0x1f1   :  { %626 = vsyncpa [#allocation3], 1 }
 0x1f2   :  { %628 = vsyncpa [#allocation3 + $0x1], 1 }
 0x1f3   :  { %629 = vsyncpa [#allocation4], 1 }
 0x1f4   :  { %631 = vsyncpa [#allocation4 + $0x1], 1 }

</bundles_post_ra>
